<compile_context>
chip_gen: v5e
topology: v5e:2x2
jax: 0.10.0
libtpu: 0.0.40
codegen_flags: <defaults>
</compile_context>

<pallas_src>
import functools

import jax
import jax.numpy as jnp
import numpy as np
from jax.experimental import pallas as pl
from jax.experimental.pallas import tpu as pltpu

# ---- model hyper-parameters (mirrors CNN.__init__) -------------------------
INPUT_DIM = 32          # input_dim
LINEAR_EXPANSION = 100  # linear_expansion
KERNEL_SIZE = 5         # kernel_size
CHANNELS = [4]          # channels  (len <= 2 -> single LazyConv1d layer)
MODEL_TYPE = "classification"
OUT_DIM = 1 if MODEL_TYPE == "regression" else 2
C_OUT = CHANNELS[0]
L_OUT = LINEAR_EXPANSION - KERNEL_SIZE + 1   # 96 (valid conv, stride 1)
FLAT_DIM = C_OUT * L_OUT                     # 384

# Batch tile: 4096 amortizes per-grid-step overhead to <10% and keeps the
# lane-padded VMEM buffers (~14 MiB total) safe on v5e/v6e/v7x with the
# explicit 32 MiB scoped-VMEM limit below.
DEFAULT_BLOCK_B = 4096
_SUBLANE = 16            # tile multiple (also covers bf16-packed x inputs)
_MIN_ROWS = 16           # pad only truly tiny batches up to one sublane tile
_SPLIT_THRESHOLD = 2048  # above this, force >= 2 grid steps (v7x megacore)
_VMEM_LIMIT_BYTES = 32 * 1024 * 1024


def _round_up(n, m):
    return ((n + m - 1) // m) * m


def _cdiv(a, b):
    return (a + b - 1) // b


def fold_conv_linear(wc, bc, w2, b2):
    """Fold Conv1d(1->C, K, valid) + flatten(c*L+l) + Linear into (W_eff, b_eff).

    logits[b, o] = b2[o] + sum_{c,l} (bc[c] + sum_k h[b, l+k] wc[c,k]) W2[c*L+l, o]
                 = b_eff[o] + sum_m h[b, m] * W_eff[m, o]
    with W_eff[m, o] = sum_{c,k,l : l+k==m} wc[c,k] * W2[c*L+l, o].
    """
    C, K = wc.shape
    O = w2.shape[-1]
    w2_c = w2.reshape(C, L_OUT, O)                       # rows grouped per channel
    w_eff = jnp.zeros((LINEAR_EXPANSION, O), jnp.float32)
    for kk in range(K):
        contrib = jnp.einsum("c,clo->lo", wc[:, kk], w2_c)   # (L_OUT, O)
        w_eff = w_eff.at[kk:kk + L_OUT].add(contrib)
    b_eff = b2.reshape(1, O) + jnp.einsum("c,clo->o", bc, w2_c)[None, :]
    return w_eff, b_eff


def cnn_kernel(x_ref, w1_ref, b1_ref, weff_ref, beff_ref, out_ref, *,
               classification):
    """Fused forward pass for one batch tile.

    x_ref   : (TB, INPUT_DIM)                f32/bf16, tiled over the batch grid
    w1_ref  : (INPUT_DIM, LINEAR_EXPANSION)  bf16, resident
    b1_ref  : (1, LINEAR_EXPANSION)          f32, resident
    weff_ref: (LINEAR_EXPANSION, OUT_DIM)    bf16, resident (folded conv+linear)
    beff_ref: (1, OUT_DIM)                   f32, resident
    out_ref : (TB, OUT_DIM)                  f32
    """
    # bf16 MXU inputs (native on v5e/v6e/v7x), f32 accumulation.
    x = x_ref[...].astype(jnp.bfloat16)
    h = jnp.dot(x, w1_ref[...], preferred_element_type=jnp.float32)
    h = jnp.maximum(h + b1_ref[...], 0.0)                        # (TB, 100) f32

    # folded conv + flatten + out_layer: one matmul (bf16 in, f32 acc)
    logits = jnp.dot(h.astype(jnp.bfloat16), weff_ref[...],
                     preferred_element_type=jnp.float32)
    logits = logits + beff_ref[...]                              # (TB, OUT_DIM)

    if classification:
        logits = jax.nn.sigmoid(logits)                          # final_activation
    out_ref[...] = logits.astype(out_ref.dtype)


def cnn_forward(x, w1, b1, wc, bc, w2, b2, block_b=DEFAULT_BLOCK_B):
    B = x.shape[0]

    # One-time weight prep (plain XLA, tiny): fold conv+linear in f32, then
    # cast the resident MXU operands to bf16.  x itself is NOT re-cast in the
    # wrapper (that would add a full extra HBM pass); the kernel casts per tile.
    w_eff, b_eff = fold_conv_linear(
        wc.astype(jnp.float32), bc.astype(jnp.float32),
        w2.astype(jnp.float32), b2.astype(jnp.float32))
    w1_bf16 = w1.astype(jnp.bfloat16)
    weff_bf16 = w_eff.astype(jnp.bfloat16)
    b1_f32 = b1.astype(jnp.float32).reshape(1, LINEAR_EXPANSION)
    beff_f32 = b_eff.astype(jnp.float32).reshape(1, OUT_DIM)

    # Only truly tiny batches get padded; otherwise the grid uses cdiv and the
    # partial last block's output writeback is masked by Pallas.
    if B < _MIN_ROWS:
        x = jnp.pad(x, ((0, _MIN_ROWS - B), (0, 0)))
    rows = x.shape[0]

    # Batch tile: multiple of 16 sublanes; ensure >= 2 grid steps for larger
    # batches so v7x's two TensorCores both get work.
    tb = min(block_b, _round_up(rows, _SUBLANE))
    if rows > _SPLIT_THRESHOLD and _cdiv(rows, tb) < 2:
        tb = _round_up(_cdiv(rows, 2), _SUBLANE)
    grid = _cdiv(rows, tb)

    kernel = functools.partial(
        cnn_kernel, classification=(MODEL_TYPE == "classification"))

    out = pl.pallas_call(
        kernel,
        out_shape=jax.ShapeDtypeStruct((rows, OUT_DIM), jnp.float32),
        grid_spec=pltpu.PrefetchScalarGridSpec(
            num_scalar_prefetch=0,
            grid=(grid,),
            in_specs=[
                pl.BlockSpec((tb, INPUT_DIM), lambda i: (i, 0)),              # x
                pl.BlockSpec((INPUT_DIM, LINEAR_EXPANSION), lambda i: (0, 0)),  # w1
                pl.BlockSpec((1, LINEAR_EXPANSION), lambda i: (0, 0)),        # b1
                pl.BlockSpec((LINEAR_EXPANSION, OUT_DIM), lambda i: (0, 0)),  # W_eff
                pl.BlockSpec((1, OUT_DIM), lambda i: (0, 0)),                 # b_eff
            ],
            out_specs=pl.BlockSpec((tb, OUT_DIM), lambda i: (i, 0)),
        ),
        compiler_params=pltpu.CompilerParams(
            dimension_semantics=("parallel",),
            vmem_limit_bytes=_VMEM_LIMIT_BYTES),
    )(x, w1_bf16, b1_f32, weff_bf16, beff_f32)

    return out[:B]


def reference(x, w1, b1, wc, bc, w2, b2):
    """Plain-JAX f32 reference mirroring the PyTorch forward (unfolded)."""
    h = jax.nn.relu(x @ w1 + b1)                                  # (B, 100)
    cols = jnp.stack([h[:, k:k + L_OUT] for k in range(KERNEL_SIZE)], axis=-1)
    y = jnp.einsum("blk,ck->bcl", cols, wc) + bc[None, :, None]   # (B, C, L)
    flat = y.reshape(x.shape[0], -1)                              # (B, C*L)
    logits = flat @ w2 + b2
    return jax.nn.sigmoid(logits) if MODEL_TYPE == "classification" else logits


if __name__ == "__main__":
    key = jax.random.PRNGKey(0)
    k_x, k_w1, k_b1, k_wc, k_bc, k_w2, k_b2, k_x2, k_x3 = jax.random.split(key, 9)

    # Deterministic synthetic parameters (shapes follow the module definition).
    w1 = jax.random.normal(k_w1, (INPUT_DIM, LINEAR_EXPANSION), jnp.float32) * 0.1
    b1 = jax.random.normal(k_b1, (1, LINEAR_EXPANSION), jnp.float32) * 0.1
    wc = jax.random.normal(k_wc, (C_OUT, KERNEL_SIZE), jnp.float32) * 0.1
    bc = jax.random.normal(k_bc, (C_OUT,), jnp.float32) * 0.1
    w2 = jax.random.normal(k_w2, (FLAT_DIM, OUT_DIM), jnp.float32) * 0.1
    b2 = jax.random.normal(k_b2, (1, OUT_DIM), jnp.float32) * 0.1

    # bf16 MXU inputs vs f32 reference -> relaxed (but still meaningful) tols.
    RTOL, ATOL = 2e-2, 5e-3

    # Small demo batch (B=2): padded to one sublane tile, single grid step.
    B = 2
    x = jax.random.normal(k_x, (B, INPUT_DIM), jnp.float32)
    out = jax.block_until_ready(cnn_forward(x, w1, b1, wc, bc, w2, b2))
    np.testing.assert_allclose(np.asarray(out),
                               np.asarray(reference(x, w1, b1, wc, bc, w2, b2)),
                               rtol=RTOL, atol=ATOL)

    # Ragged batch, single partial block (no wrapper pad): exercises masked
    # output writeback of the partial tail.
    B2 = 1030
    x2 = jax.random.normal(k_x2, (B2, INPUT_DIM), jnp.float32)
    out2 = jax.block_until_ready(cnn_forward(x2, w1, b1, wc, bc, w2, b2))
    np.testing.assert_allclose(np.asarray(out2),
                               np.asarray(reference(x2, w1, b1, wc, bc, w2, b2)),
                               rtol=RTOL, atol=ATOL)

    # Multi-step grid (grid=2, second block partial): exercises the pipelined
    # batch grid + megacore-friendly split path.
    B3 = 4100
    x3 = jax.random.normal(k_x3, (B3, INPUT_DIM), jnp.float32)
    out3 = jax.block_until_ready(cnn_forward(x3, w1, b1, wc, bc, w2, b2))
    np.testing.assert_allclose(np.asarray(out3),
                               np.asarray(reference(x3, w1, b1, wc, bc, w2, b2)),
                               rtol=RTOL, atol=ATOL)

    print("KERNEL_OK")
</pallas_src>

<mosaic_0001>
module attributes {stable_mosaic.version = 11 : i64} {
  func.func @cnn_kernel(%arg0: i32, %arg1: memref<16x32xf32, #tpu.memory_space<vmem>>, %arg2: memref<32x100xbf16, #tpu.memory_space<vmem>>, %arg3: memref<1x100xf32, #tpu.memory_space<vmem>>, %arg4: memref<100x2xbf16, #tpu.memory_space<vmem>>, %arg5: memref<1x2xf32, #tpu.memory_space<vmem>>, %arg6: memref<16x2xf32, #tpu.memory_space<vmem>>) attributes {dimension_semantics = [#tpu.dimension_semantics<parallel>], iteration_bounds = array<i64: 1>, scalar_prefetch = 0 : i64, scratch_operands = 0 : i64, tpu.core_type = #tpu.core_type<tc>, window_params = [{transform_indices = @transform_0, window_bounds = array<i64: 16, 32>}, {pipeline_mode = #tpu.pipeline_mode<synchronous>, transform_indices = @transform_1, window_bounds = array<i64: 32, 100>}, {pipeline_mode = #tpu.pipeline_mode<synchronous>, transform_indices = @transform_2, window_bounds = array<i64: 1, 100>}, {pipeline_mode = #tpu.pipeline_mode<synchronous>, transform_indices = @transform_3, window_bounds = array<i64: 100, 2>}, {pipeline_mode = #tpu.pipeline_mode<synchronous>, transform_indices = @transform_4, window_bounds = array<i64: 1, 2>}, {transform_indices = @transform_5, window_bounds = array<i64: 16, 2>}]} {
    %c0 = arith.constant 0 : index
    %c0_0 = arith.constant 0 : index
    %0 = vector.load %arg1[%c0, %c0_0] : memref<16x32xf32, #tpu.memory_space<vmem>>, vector<16x32xf32>
    %1 = arith.truncf %0 : vector<16x32xf32> to vector<16x32xbf16>
    %c0_1 = arith.constant 0 : index
    %c0_2 = arith.constant 0 : index
    %2 = vector.load %arg2[%c0_1, %c0_2] : memref<32x100xbf16, #tpu.memory_space<vmem>>, vector<32x100xbf16>
    %cst = arith.constant dense<0.000000e+00> : vector<16x100xf32>
    %3 = tpu.matmul %1, %2, %cst {dimension_numbers = #tpu.dot_dimension_numbers<[1], [0], [0], [1], [0, 0, 1, 1], [], []>} : vector<16x32xbf16>, vector<32x100xbf16>, vector<16x100xf32> -> vector<16x100xf32>
    %c0_3 = arith.constant 0 : index
    %c0_4 = arith.constant 0 : index
    %4 = vector.load %arg3[%c0_3, %c0_4] : memref<1x100xf32, #tpu.memory_space<vmem>>, vector<1x100xf32>
    %5 = vector.broadcast %4 : vector<1x100xf32> to vector<16x100xf32>
    %6 = arith.addf %3, %5 : vector<16x100xf32>
    %cst_5 = arith.constant 0.000000e+00 : f32
    %7 = vector.broadcast %cst_5 : f32 to vector<16x100xf32>
    %8 = arith.maximumf %6, %7 : vector<16x100xf32>
    %9 = arith.truncf %8 : vector<16x100xf32> to vector<16x100xbf16>
    %c0_6 = arith.constant 0 : index
    %c0_7 = arith.constant 0 : index
    %10 = vector.load %arg4[%c0_6, %c0_7] : memref<100x2xbf16, #tpu.memory_space<vmem>>, vector<100x2xbf16>
    %cst_8 = arith.constant dense<0.000000e+00> : vector<16x2xf32>
    %11 = tpu.matmul %9, %10, %cst_8 {dimension_numbers = #tpu.dot_dimension_numbers<[1], [0], [0], [1], [0, 0, 1, 1], [], []>} : vector<16x100xbf16>, vector<100x2xbf16>, vector<16x2xf32> -> vector<16x2xf32>
    %c0_9 = arith.constant 0 : index
    %c0_10 = arith.constant 0 : index
    %12 = vector.load %arg5[%c0_9, %c0_10] : memref<1x2xf32, #tpu.memory_space<vmem>>, vector<1x2xf32>
    %13 = vector.broadcast %12 : vector<1x2xf32> to vector<16x2xf32>
    %14 = arith.addf %11, %13 : vector<16x2xf32>
    %15 = arith.negf %14 : vector<16x2xf32>
    %16 = math.exp %15 : vector<16x2xf32>
    %cst_11 = arith.constant 1.000000e+00 : f32
    %17 = vector.broadcast %cst_11 : f32 to vector<16x2xf32>
    %18 = arith.addf %17, %16 : vector<16x2xf32>
    %19 = arith.divf %17, %18 : vector<16x2xf32>
    %c0_12 = arith.constant 0 : index
    %c0_13 = arith.constant 0 : index
    %20 = vector.load %arg6[%c0_12, %c0_13] : memref<16x2xf32, #tpu.memory_space<vmem>>, vector<16x2xf32>
    tpu.vector_store %arg6[%c0_12, %c0_13], %19 {strides = array<i32>} : memref<16x2xf32, #tpu.memory_space<vmem>>, vector<16x2xf32>,
    return
  }
  func.func @transform_0(%arg0: i32) -> (i32, i32) {
    %c0_i32 = arith.constant 0 : i32
    %c0_i32_0 = arith.constant 0 : i32
    return %arg0, %c0_i32 : i32, i32
  }
  func.func @transform_1(%arg0: i32) -> (i32, i32) {
    %c0_i32 = arith.constant 0 : i32
    %c0_i32_0 = arith.constant 0 : i32
    %c0_i32_1 = arith.constant 0 : i32
    return %c0_i32, %c0_i32_0 : i32, i32
  }
  func.func @transform_2(%arg0: i32) -> (i32, i32) {
    %c0_i32 = arith.constant 0 : i32
    %c0_i32_0 = arith.constant 0 : i32
    %c0_i32_1 = arith.constant 0 : i32
    return %c0_i32, %c0_i32_0 : i32, i32
  }
  func.func @transform_3(%arg0: i32) -> (i32, i32) {
    %c0_i32 = arith.constant 0 : i32
    %c0_i32_0 = arith.constant 0 : i32
    %c0_i32_1 = arith.constant 0 : i32
    return %c0_i32, %c0_i32_0 : i32, i32
  }
  func.func @transform_4(%arg0: i32) -> (i32, i32) {
    %c0_i32 = arith.constant 0 : i32
    %c0_i32_0 = arith.constant 0 : i32
    %c0_i32_1 = arith.constant 0 : i32
    return %c0_i32, %c0_i32_0 : i32, i32
  }
  func.func @transform_5(%arg0: i32) -> (i32, i32) {
    %c0_i32 = arith.constant 0 : i32
    %c0_i32_0 = arith.constant 0 : i32
    return %arg0, %c0_i32 : i32, i32
  }
}

</mosaic_0001>

<bundles_post_ra>
// kernel: tpu_custom_call.1
= control target key start
LH: loop header
LB: loop body
LE: loop exit
PB: predicated region body
PF: predicated region fallthrough
CT: control target
= control target key end

     0   :  { %vm125_vm0 = vcmask 1041408   ;;  %vm44_vm1 = vcmask 261120   ;;  %vm121_vm2 = vcmask 818176   ;;  %vm181_vm6 = vcmask 15360   ;;  %s319_s1 = inlined_call_operand.vmem [shape: bf16[32,100], index: 1, kind: input, shape index: {}]   ;;  %s320_s0 = inlined_call_operand.vmem [shape: f32[16,32], index: 0, kind: input, shape index: {}]   ;;  %s321_s3 = inlined_call_operand.vmem [shape: bf16[100,2], index: 3, kind: input, shape index: {}]   ;;  %s322_s2 = inlined_call_operand.vmem [shape: f32[1,100], index: 2, kind: input, shape index: {}]   ;;  %s323_s4 = inlined_call_operand.vmem [shape: f32[1,2], index: 4, kind: input, shape index: {}]   ;;  %s324_s5 = inlined_call_operand.vmem [shape: f32[16,2], index: 5, kind: output, shape index: {}]  }
   0x1   :  { %v225_v0 = vld [vmem:[%s319_s1 + $0x8] sm:$0xff]  ;;  %v224_v1 = vld [vmem:[%s319_s1] sm:$0xff]  ;;  %v77_v2 = vld [vmem:[%s321_s3 + $0x30] sm:$0x3] }
   0x2   :  { %54 = vmatpush.bf16.msra.mxu0 %v225_v0  ;;  %v21_v3 = vld [vmem:[%s320_s0] sm:$0xff]  ;;  %v22_v4 = vld [vmem:[%s320_s0 + $0x8] sm:$0xff]  ;;  %v107_v5 = vunpack.c.l.b16 %v77_v2  ;;  %v229_v11 = vld [vmem:[%s321_s3 + $0x18] sm:$0xff] }
   0x3   :  { %v23_v7 = vpack.c.bf16 %v22_v4, %v21_v3  ;;  %v231_v9 = vld [vmem:[%s321_s3 + $0x28] sm:$0xff]  ;;  %v230_v10 = vld [vmem:[%s321_s3 + $0x20] sm:$0xff]  ;;  %v228_v12 = vld [vmem:[%s321_s3 + $0x10] sm:$0xff] }
   0x4   :  { %v114_v6 = vpack.c.b16 %v107_v5, %v107_v5  ;;  %v227_v13 = vld [vmem:[%s321_s3 + $0x8] sm:$0xff]  ;;  %v226_v14 = vld [vmem:[%s321_s3] sm:$0xff] }
   0x5   :  { %v232_v16 = vld [vmem:[%s322_s2] ss:$0 sm:$0xff] }
   0x6   :  { %55 = vmatpush.bf16.msra.mxu0 %v224_v1  ;;  %v127_v8 = vsel %vm125_vm0, %v114_v6, 0  ;;  %v233_v23 = vld [vmem:[%s323_s4] ss:$0 sm:$0xff] }
   0x7   :  { %130 = vmatpush.bf16.msra.mxu1 %v127_v8 }
   0x9   :  { %196 = vmatmul.msk.bf16.vlgmr.msra.gmra.mxu0 %vm44_vm1, %v23_v7 }
   0xb   :  { %131 = vmatpush.bf16.msra.mxu1 %v231_v9 }
   0xf   :  { %132 = vmatpush.bf16.msra.mxu1 %v230_v10 }
  0x13   :  { %133 = vmatpush.bf16.msra.mxu1 %v229_v11 }
  0x17   :  { %134 = vmatpush.bf16.msra.mxu1 %v228_v12 }
  0x1b   :  { %135 = vmatpush.bf16.msra.mxu1 %v227_v13 }
  0x1f   :  { %136 = vmatpush.bf16.msra.mxu1 %v226_v14 }
  0x86   :  { %v57_v15 = vpop.f32.mrf.mxu0 }
  0x87   :  { %v58_v17 = vadd.f32 %v232_v16, %v57_v15 }
  0x89   :  { %v62_v20 = vmax.f32 %v58_v17, 0.0 }
  0x8e   :  { %v59_v18 = vpop.f32.mrf.mxu0 }
  0x8f   :  { %v60_v19 = vadd.f32 %v232_v16, %v59_v18 }
  0x91   :  { %v63_v21 = vmax.f32 %v60_v19, 0.0 }
  0x93   :  { %v64_v22 = vpack.c.bf16 %v63_v21, %v62_v20 }
  0x95   :  { %221 = vmatmul.msk.bf16.vlgmr.msra.gmra.mxu1 %vm121_vm2, %v64_v22 }
 0x112   :  { %v138_v24 = vpop.f32.mrf.mxu1 }
 0x113   :  { %v139_v25 = vadd.f32 %v233_v23, %v138_v24 }
 0x115   :  { %v222_v26 = vmul.f32 -1.442695, %v139_v25 }
 0x117   :  { %234 = vpow2.f32 %v222_v26 }
 0x11a   :  { %v140_v27 = vpop.f32.mrf.mxu1 }
 0x11b   :  { %v141_v28 = vadd.f32 %v233_v23, %v140_v27 }
 0x11d   :  { %v235_v29 = vpop.eup %234  ;;  %v223_v30 = vmul.f32 -1.442695, %v141_v28 }
 0x11e   :  { %v149_v31 = vadd.f32 1.0, %v235_v29 }
 0x11f   :  { %236 = vpow2.f32 %v223_v30 }
 0x120   :  { %238 = vrcp.f32 %v149_v31  ;;  %v162_v37 = vand.u32 2147483648, %v149_v31  ;;  %v160_v39 = vand.u32 2147483647, %v149_v31  ;;  %vm156_vm4 = vweird.f32 %v149_v31 }
 0x122   :  { %v163_v42 = vor.u32 1.1754944e-38, %v162_v37  ;;  %vm161_vm7 = vcmp.eq.f32.partialorder %v160_v39, 8.507059e+37 }
 0x125   :  { %v237_v32 = vpop.eup %236 }
 0x126   :  { %v239_v33 = vpop.eup %238  ;;  %v150_v34 = vadd.f32 1.0, %v237_v32 }
 0x127   :  { %v152_v35 = vmul.f32 %v239_v33, %v149_v31  ;;  %vm157_vm3 = vweird.f32 %v239_v33 }
 0x128   :  { %240 = vrcp.f32 %v150_v34  ;;  %vm158_vm5 = vmor %vm156_vm4, %vm157_vm3  ;;  %v177_v47 = vand.u32 2147483648, %v150_v34  ;;  %v175_v49 = vand.u32 2147483647, %v150_v34  ;;  %vm171_vm9 = vweird.f32 %v150_v34 }
 0x129   :  { %v153_v36 = vsub.f32 1.0, %v152_v35 }
 0x12a   :  { %v178_v51 = vor.u32 1.1754944e-38, %v177_v47  ;;  %vm176_vm11 = vcmp.eq.f32.partialorder %v175_v49, 8.507059e+37 }
 0x12b   :  { %v154_v38 = vmul.f32 %v239_v33, %v153_v36 }
 0x12d   :  { %v155_v40 = vadd.f32 %v239_v33, %v154_v38 }
 0x12e   :  { %v241_v41 = vpop.eup %240 }
 0x12f   :  { %v159_v43 = vsel %vm158_vm5, %v239_v33, %v155_v40  ;;  %v167_v44 = vmul.f32 %v241_v41, %v150_v34  ;;  %vm172_vm8 = vweird.f32 %v241_v41 }
 0x130   :  { %v164_v45 = vsel %vm161_vm7, %v163_v42, %v159_v43  ;;  %vm173_vm10 = vmor %vm171_vm9, %vm172_vm8 }
 0x131   :  { %182 = vst.msk [vmem:[%s324_s5] sm:$0xff] %vm181_vm6, %v164_v45  ;;  %v168_v46 = vsub.f32 1.0, %v167_v44 }
 0x133   :  { %v169_v48 = vmul.f32 %v241_v41, %v168_v46 }
 0x135   :  { %v170_v50 = vadd.f32 %v241_v41, %v169_v48 }
 0x137   :  { %v174_v52 = vsel %vm173_vm10, %v241_v41, %v170_v50 }
 0x138   :  { %v179_v53 = vsel %vm176_vm11, %v178_v51, %v174_v52 }
 0x139   :  { %183 = vst.msk [vmem:[%s324_s5 + $0x8] sm:$0xff] %vm181_vm6, %v179_v53 }

</bundles_post_ra>
